<compile_context>
chip_gen: v7x
topology: tpu7x:2x2x1
jax: 0.10.0
libtpu: 0.0.40
codegen_flags: <defaults>
</compile_context>

<pallas_src>
import functools

import jax
import jax.numpy as jnp
from jax import lax
from jax.experimental import pallas as pl
from jax.experimental.pallas import tpu as pltpu


def _round_up(x, m):
    return ((x + m - 1) // m) * m


def _fold_bn(gamma, beta, mean, var, eps=1e-5):
    scale = gamma / jnp.sqrt(var + eps)
    shift = beta - mean * scale
    return scale, shift


# --------------------------------------------------------------------------- #
# Kernel: three chained MXU matmuls in transposed (channel-major) layout.
# --------------------------------------------------------------------------- #
def _classification_path_kernel(p_ref, w1_ref, w2_ref, w3_ref, b_ref, out_ref,
                                *, f0p, f1p):
    """out = W3'^T @ relu(W2'^T @ relu(W1^T @ P + b1) + b2') + b3' (BN pre-folded)."""
    b = b_ref[...]                       # [f0p+f1p+f2p, 1] f32 column vector
    b1 = b[:f0p, :]
    b2 = b[f0p:f0p + f1p, :]
    b3 = b[f0p + f1p:, :]

    p = p_ref[0]                         # [k1, tm] bf16 im2col columns
    # Conv1 (kxk as im2col matmul): bf16 MXU operands, f32 accumulation.
    h = jnp.dot(w1_ref[...], p, preferred_element_type=jnp.float32)   # [f0p, tm]
    h = jnp.maximum(h + b1, 0.0)         # bias + ReLU in f32 (VPU)
    # Conv2 (1x1, BN1 folded into W2'/b2'). Dropout = identity.
    h = jnp.dot(w2_ref[...], h.astype(jnp.bfloat16),
                preferred_element_type=jnp.float32)                   # [f1p, tm]
    h = jnp.maximum(h + b2, 0.0)
    # Conv3 (1x1, BN2 folded into W3'/b3').
    h = jnp.dot(w3_ref[...], h.astype(jnp.bfloat16),
                preferred_element_type=jnp.float32)                   # [f2p, tm]
    out_ref[0] = (h + b3).astype(out_ref.dtype)   # bf16, channel-major, lane-dense


# --------------------------------------------------------------------------- #
# One-time weight preparation (hoisted out of the per-call path).
# --------------------------------------------------------------------------- #
def prepare_params(params, kernel_size):
    """Fold BN into downstream 1x1 convs, pad channel dims to 128, cast to bf16,
    and pack the three biases into one f32 column vector.  Call ONCE."""
    kh, kw = kernel_size

    # PyTorch Conv2d weight [F, C, kh, kw] -> [F, C*kh*kw] == W^T (matmul-left).
    w1t = params["w1"].astype(jnp.float32).reshape(params["w1"].shape[0], -1)
    w2t = params["w2"].astype(jnp.float32).reshape(params["w2"].shape[0], -1)
    w3t = params["w3"].astype(jnp.float32).reshape(params["w3"].shape[0], -1)
    f0, k1 = w1t.shape
    f1, f2 = w2t.shape[0], w3t.shape[0]

    s1, t1 = _fold_bn(params["bn1_gamma"], params["bn1_beta"],
                      params["bn1_mean"], params["bn1_var"])
    s2, t2 = _fold_bn(params["bn2_gamma"], params["bn2_beta"],
                      params["bn2_mean"], params["bn2_var"])

    # Fold BN1 into (W2, b2) and BN2 into (W3, b3).
    b1 = params["b1"].astype(jnp.float32)
    w2tf = w2t * s1[None, :]
    b2f = w2t @ t1 + params["b2"].astype(jnp.float32)
    w3tf = w3t * s2[None, :]
    b3f = w3t @ t2 + params["b3"].astype(jnp.float32)

    # Zero-pad output-channel dims to multiples of 128 (lane-dense tiles).
    # Do NOT pad k1 -- it only adds HBM bytes, MXU pads the contraction itself.
    f0p, f1p, f2p = (_round_up(v, 128) for v in (f0, f1, f2))
    w1p = jnp.zeros((f0p, k1), jnp.float32).at[:f0].set(w1t)
    w2p = jnp.zeros((f1p, f0p), jnp.float32).at[:f1, :f0].set(w2tf)
    w3p = jnp.zeros((f2p, f1p), jnp.float32).at[:f2, :f1].set(w3tf)
    b1p = jnp.zeros((f0p,), jnp.float32).at[:f0].set(b1)
    b2p = jnp.zeros((f1p,), jnp.float32).at[:f1].set(b2f)
    b3p = jnp.zeros((f2p,), jnp.float32).at[:f2].set(b3f)
    biases = jnp.concatenate([b1p, b2p, b3p]).reshape(-1, 1)   # [bw, 1] column

    return {
        "w1": w1p.astype(jnp.bfloat16),
        "w2": w2p.astype(jnp.bfloat16),
        "w3": w3p.astype(jnp.bfloat16),
        "biases": biases,
    }


# --------------------------------------------------------------------------- #
# Forward pass.
# --------------------------------------------------------------------------- #
@functools.partial(jax.jit, static_argnames=("kernel_size", "num_out", "tm"))
def classification_path_forward(x, prep, *, kernel_size, num_out, tm=256):
    """x: [N, C_in, H, W] (NCHW, like PyTorch). Returns [N, num_out, Ho, Wo] bf16."""
    kh, kw = kernel_size
    n, c, h, w = x.shape
    ho, wo = h - kh + 1, w - kw + 1
    hw = ho * wo
    k1 = c * kh * kw

    # bf16 BEFORE im2col/pad: halves the glue-side HBM traffic of the 9x expansion.
    x = x.astype(jnp.bfloat16)

    # im2col directly in the transposed layout [N, K1, Ho*Wo]; K1 ordered
    # (c, i, j) to match w1.reshape(F0, C*kh*kw). No NHWC transpose needed.
    cols = [x[:, :, i:i + ho, j:j + wo] for i in range(kh) for j in range(kw)]
    p = jnp.stack(cols, axis=2)                   # [N, C, kh*kw, Ho, Wo]
    p = p.reshape(n, k1, hw)                      # [N, K1, HW]

    w1p, w2p, w3p, biases = prep["w1"], prep["w2"], prep["w3"], prep["biases"]
    f0p, f1p, f2p = w1p.shape[0], w2p.shape[0], w3p.shape[0]
    bw = biases.shape[0]

    # Tile the pixel axis; tm multiple of 128 keeps every output store lane-dense.
    tm = max(128, min(tm, _round_up(hw, 128)))
    hwp = _round_up(hw, tm)
    p = jnp.pad(p, ((0, 0), (0, 0), (0, hwp - hw)))     # bf16 pad (cheap)

    grid = (n, hwp // tm)                               # demo: (2, 1) -> 2 parallel steps
    kernel = functools.partial(_classification_path_kernel, f0p=f0p, f1p=f1p)

    flops = 2 * n * hwp * (k1 * f0p + f0p * f1p + f1p * f2p)
    bytes_accessed = (n * k1 * hwp * 2                            # patches (bf16)
                      + (f0p * k1 + f1p * f0p + f2p * f1p) * 2    # weights (bf16)
                      + bw * 4                                    # biases (f32)
                      + n * f2p * hwp * 2)                        # output (bf16)

    out = pl.pallas_call(
        kernel,
        out_shape=jax.ShapeDtypeStruct((n, f2p, hwp), jnp.bfloat16),
        grid_spec=pl.GridSpec(
            grid=grid,
            in_specs=[
                pl.BlockSpec((1, k1, tm), lambda b, j: (b, 0, j)),   # patch tile
                pl.BlockSpec((f0p, k1), lambda b, j: (0, 0)),        # W1^T
                pl.BlockSpec((f1p, f0p), lambda b, j: (0, 0)),       # W2'^T (BN1 folded)
                pl.BlockSpec((f2p, f1p), lambda b, j: (0, 0)),       # W3'^T (BN2 folded)
                pl.BlockSpec((bw, 1), lambda b, j: (0, 0)),          # [b1 | b2' | b3']
            ],
            out_specs=pl.BlockSpec((1, f2p, tm), lambda b, j: (b, 0, j)),
        ),
        compiler_params=pltpu.CompilerParams(
            dimension_semantics=("parallel", "parallel")),
        cost_estimate=pl.CostEstimate(flops=flops, transcendentals=0,
                                      bytes_accessed=bytes_accessed),
    )(p, w1p, w2p, w3p, biases)

    # Output is already channel-major (NCHW order): slice off padding + reshape.
    # (No transpose. When num_out and Ho*Wo are multiples of 128 this is free.)
    return out[:, :num_out, :hw].reshape(n, num_out, ho, wo)


# --------------------------------------------------------------------------- #
# Pure-JAX reference (f32, lax.conv) for validation.
# --------------------------------------------------------------------------- #
def _reference_forward(x, params, kernel_size):
    def conv(x, w, b):
        y = lax.conv_general_dilated(
            x, w, window_strides=(1, 1), padding="VALID",
            dimension_numbers=("NCHW", "OIHW", "NCHW"))
        return y + b[None, :, None, None]

    def bn(x, g, bta, mu, var, eps=1e-5):
        s = g / jnp.sqrt(var + eps)
        return x * s[None, :, None, None] + (bta - mu * s)[None, :, None, None]

    y = jnp.maximum(conv(x, params["w1"], params["b1"]), 0.0)
    y = bn(y, params["bn1_gamma"], params["bn1_beta"],
           params["bn1_mean"], params["bn1_var"])
    y = jnp.maximum(conv(y, params["w2"], params["b2"]), 0.0)
    y = bn(y, params["bn2_gamma"], params["bn2_beta"],
           params["bn2_mean"], params["bn2_var"])
    return conv(y, params["w3"], params["b3"])


def init_params(key, in_channels, num_filters, kernel_size):
    kh, kw = kernel_size
    f0, f1, f2 = num_filters
    ks = jax.random.split(key, 12)
    return {
        "w1": jax.random.normal(ks[0], (f0, in_channels, kh, kw), jnp.float32) * 0.1,
        "b1": jax.random.normal(ks[1], (f0,), jnp.float32) * 0.1,
        "w2": jax.random.normal(ks[2], (f1, f0, 1, 1), jnp.float32) * 0.1,
        "b2": jax.random.normal(ks[3], (f1,), jnp.float32) * 0.1,
        "w3": jax.random.normal(ks[4], (f2, f1, 1, 1), jnp.float32) * 0.1,
        "b3": jax.random.normal(ks[5], (f2,), jnp.float32) * 0.1,
        "bn1_gamma": jax.random.uniform(ks[6], (f0,), jnp.float32, 0.5, 1.5),
        "bn1_beta": jax.random.normal(ks[7], (f0,), jnp.float32) * 0.1,
        "bn1_mean": jax.random.normal(ks[8], (f0,), jnp.float32) * 0.1,
        "bn1_var": jax.random.uniform(ks[9], (f0,), jnp.float32, 0.5, 1.5),
        "bn2_gamma": jax.random.uniform(ks[10], (f1,), jnp.float32, 0.5, 1.5),
        "bn2_beta": jax.random.normal(ks[11], (f1,), jnp.float32) * 0.1,
        "bn2_mean": jnp.zeros((f1,), jnp.float32),
        "bn2_var": jnp.ones((f1,), jnp.float32),
    }


if __name__ == "__main__":
    key = jax.random.PRNGKey(0)
    kx, kp = jax.random.split(key)

    in_channels = 4
    num_filters = (32, 64, 128)
    kernel_size = (3, 3)
    x = jax.random.normal(kx, (2, in_channels, 16, 16), jnp.float32)  # NCHW

    params = init_params(kp, in_channels, num_filters, kernel_size)

    # One-time weight prep (BN fold + pad + bf16), outside the per-call path.
    prep = prepare_params(params, kernel_size)

    out = classification_path_forward(x, prep, kernel_size=kernel_size,
                                      num_out=num_filters[2])
    out = jax.block_until_ready(out)

    ref = _reference_forward(x, params, kernel_size)
    assert out.shape == ref.shape == (2, num_filters[2], 14, 14), out.shape
    # bf16 MXU operands + bf16 output with folded BN -> relaxed tolerance vs f32 ref.
    out_f32 = out.astype(jnp.float32)
    max_err = float(jnp.max(jnp.abs(out_f32 - ref)))
    assert jnp.allclose(out_f32, ref, atol=5e-2, rtol=5e-2), max_err

    print("KERNEL_OK")
</pallas_src>

<mosaic_0001>
module attributes {stable_mosaic.version = 11 : i64} {
  func.func @_classification_path_kernel(%arg0: i32, %arg1: i32, %arg2: memref<1x36x256xbf16, #tpu.memory_space<vmem>>, %arg3: memref<128x36xbf16, #tpu.memory_space<vmem>>, %arg4: memref<128x128xbf16, #tpu.memory_space<vmem>>, %arg5: memref<128x128xbf16, #tpu.memory_space<vmem>>, %arg6: memref<384x1xf32, #tpu.memory_space<vmem>>, %arg7: memref<1x128x256xbf16, #tpu.memory_space<vmem>>) attributes {dimension_semantics = [#tpu.dimension_semantics<parallel>, #tpu.dimension_semantics<parallel>], iteration_bounds = array<i64: 2, 1>, scalar_prefetch = 0 : i64, scratch_operands = 0 : i64, tpu.core_type = #tpu.core_type<tc>, window_params = [{transform_indices = @transform_0, window_bounds = array<i64: 1, 36, 256>}, {pipeline_mode = #tpu.pipeline_mode<synchronous>, transform_indices = @transform_1, window_bounds = array<i64: 128, 36>}, {pipeline_mode = #tpu.pipeline_mode<synchronous>, transform_indices = @transform_2, window_bounds = array<i64: 128, 128>}, {pipeline_mode = #tpu.pipeline_mode<synchronous>, transform_indices = @transform_3, window_bounds = array<i64: 128, 128>}, {pipeline_mode = #tpu.pipeline_mode<synchronous>, transform_indices = @transform_4, window_bounds = array<i64: 384, 1>}, {transform_indices = @transform_5, window_bounds = array<i64: 1, 128, 256>}]} {
    %c0 = arith.constant 0 : index
    %c0_0 = arith.constant 0 : index
    %0 = vector.load %arg6[%c0, %c0_0] : memref<384x1xf32, #tpu.memory_space<vmem>>, vector<384x1xf32>
    %1 = vector.extract_strided_slice %0 {offsets = [0, 0], sizes = [128, 1], strides = [1, 1]} : vector<384x1xf32> to vector<128x1xf32>
    %2 = vector.extract_strided_slice %0 {offsets = [128, 0], sizes = [128, 1], strides = [1, 1]} : vector<384x1xf32> to vector<128x1xf32>
    %3 = vector.extract_strided_slice %0 {offsets = [256, 0], sizes = [128, 1], strides = [1, 1]} : vector<384x1xf32> to vector<128x1xf32>
    %c0_1 = arith.constant 0 : index
    %c0_2 = arith.constant 0 : index
    %c0_3 = arith.constant 0 : index
    %4 = vector.load %arg2[%c0_1, %c0_2, %c0_3] : memref<1x36x256xbf16, #tpu.memory_space<vmem>>, vector<1x36x256xbf16>
    %5 = vector.shape_cast %4 : vector<1x36x256xbf16> to vector<36x256xbf16>
    %c0_4 = arith.constant 0 : index
    %c0_5 = arith.constant 0 : index
    %6 = vector.load %arg3[%c0_4, %c0_5] : memref<128x36xbf16, #tpu.memory_space<vmem>>, vector<128x36xbf16>
    %cst = arith.constant dense<0.000000e+00> : vector<128x256xf32>
    %7 = tpu.matmul %6, %5, %cst {dimension_numbers = #tpu.dot_dimension_numbers<[1], [0], [0], [1], [0, 0, 1, 1], [], []>} : vector<128x36xbf16>, vector<36x256xbf16>, vector<128x256xf32> -> vector<128x256xf32>
    %8 = vector.broadcast %1 : vector<128x1xf32> to vector<128x256xf32>
    %9 = arith.addf %7, %8 : vector<128x256xf32>
    %cst_6 = arith.constant 0.000000e+00 : f32
    %10 = vector.broadcast %cst_6 : f32 to vector<128x256xf32>
    %11 = arith.maximumf %9, %10 : vector<128x256xf32>
    %c0_7 = arith.constant 0 : index
    %c0_8 = arith.constant 0 : index
    %12 = vector.load %arg4[%c0_7, %c0_8] : memref<128x128xbf16, #tpu.memory_space<vmem>>, vector<128x128xbf16>
    %13 = arith.truncf %11 : vector<128x256xf32> to vector<128x256xbf16>
    %cst_9 = arith.constant dense<0.000000e+00> : vector<128x256xf32>
    %14 = tpu.matmul %12, %13, %cst_9 {dimension_numbers = #tpu.dot_dimension_numbers<[1], [0], [0], [1], [0, 0, 1, 1], [], []>} : vector<128x128xbf16>, vector<128x256xbf16>, vector<128x256xf32> -> vector<128x256xf32>
    %15 = vector.broadcast %2 : vector<128x1xf32> to vector<128x256xf32>
    %16 = arith.addf %14, %15 : vector<128x256xf32>
    %cst_10 = arith.constant 0.000000e+00 : f32
    %17 = vector.broadcast %cst_10 : f32 to vector<128x256xf32>
    %18 = arith.maximumf %16, %17 : vector<128x256xf32>
    %c0_11 = arith.constant 0 : index
    %c0_12 = arith.constant 0 : index
    %19 = vector.load %arg5[%c0_11, %c0_12] : memref<128x128xbf16, #tpu.memory_space<vmem>>, vector<128x128xbf16>
    %20 = arith.truncf %18 : vector<128x256xf32> to vector<128x256xbf16>
    %cst_13 = arith.constant dense<0.000000e+00> : vector<128x256xf32>
    %21 = tpu.matmul %19, %20, %cst_13 {dimension_numbers = #tpu.dot_dimension_numbers<[1], [0], [0], [1], [0, 0, 1, 1], [], []>} : vector<128x128xbf16>, vector<128x256xbf16>, vector<128x256xf32> -> vector<128x256xf32>
    %22 = vector.broadcast %3 : vector<128x1xf32> to vector<128x256xf32>
    %23 = arith.addf %21, %22 : vector<128x256xf32>
    %24 = arith.truncf %23 : vector<128x256xf32> to vector<128x256xbf16>
    %c0_14 = arith.constant 0 : index
    %c0_15 = arith.constant 0 : index
    %c0_16 = arith.constant 0 : index
    %25 = vector.load %arg7[%c0_14, %c0_15, %c0_16] : memref<1x128x256xbf16, #tpu.memory_space<vmem>>, vector<1x128x256xbf16>
    %26 = vector.shape_cast %25 : vector<1x128x256xbf16> to vector<128x256xbf16>
    %27 = vector.shape_cast %24 : vector<128x256xbf16> to vector<1x128x256xbf16>
    tpu.vector_store %arg7[%c0_14, %c0_15, %c0_16], %27 {strides = array<i32>} : memref<1x128x256xbf16, #tpu.memory_space<vmem>>, vector<1x128x256xbf16>,
    return
  }
  func.func @transform_0(%arg0: i32, %arg1: i32) -> (i32, i32, i32) {
    %c0_i32 = arith.constant 0 : i32
    %c0_i32_0 = arith.constant 0 : i32
    return %arg0, %c0_i32, %arg1 : i32, i32, i32
  }
  func.func @transform_1(%arg0: i32, %arg1: i32) -> (i32, i32) {
    %c0_i32 = arith.constant 0 : i32
    %c0_i32_0 = arith.constant 0 : i32
    %c0_i32_1 = arith.constant 0 : i32
    return %c0_i32, %c0_i32_0 : i32, i32
  }
  func.func @transform_2(%arg0: i32, %arg1: i32) -> (i32, i32) {
    %c0_i32 = arith.constant 0 : i32
    %c0_i32_0 = arith.constant 0 : i32
    %c0_i32_1 = arith.constant 0 : i32
    return %c0_i32, %c0_i32_0 : i32, i32
  }
  func.func @transform_3(%arg0: i32, %arg1: i32) -> (i32, i32) {
    %c0_i32 = arith.constant 0 : i32
    %c0_i32_0 = arith.constant 0 : i32
    %c0_i32_1 = arith.constant 0 : i32
    return %c0_i32, %c0_i32_0 : i32, i32
  }
  func.func @transform_4(%arg0: i32, %arg1: i32) -> (i32, i32) {
    %c0_i32 = arith.constant 0 : i32
    %c0_i32_0 = arith.constant 0 : i32
    %c0_i32_1 = arith.constant 0 : i32
    return %c0_i32, %c0_i32_0 : i32, i32
  }
  func.func @transform_5(%arg0: i32, %arg1: i32) -> (i32, i32, i32) {
    %c0_i32 = arith.constant 0 : i32
    %c0_i32_0 = arith.constant 0 : i32
    return %arg0, %c0_i32, %arg1 : i32, i32, i32
  }
}

</mosaic_0001>

<bundles_post_ra>
// kernel: classification_path_forward.1
= control target key start
LH: loop header
LB: loop body
LE: loop exit
PB: predicated region body
PF: predicated region fallthrough
CT: control target
= control target key end

     0   :  { %s1636_s18 = smov 0   ;;  %s1638_s19 = smov 0   ;;  %s1969_s0 = inlined_call_operand.vmem [shape: bf16[2,36,256], index: 0, kind: input, shape index: {}]   ;;  %s1970_s1 = inlined_call_operand.vmem [shape: bf16[128,36], index: 1, kind: input, shape index: {}]   ;;  %s1971_s2 = inlined_call_operand.vmem [shape: bf16[128,128], index: 2, kind: input, shape index: {}]   ;;  %s1972_s3 = inlined_call_operand.vmem [shape: bf16[128,128], index: 3, kind: input, shape index: {}]   ;;  %s1973_s4 = inlined_call_operand.vmem [shape: f32[384,1], index: 4, kind: input, shape index: {}]   ;;  %s1974_s5 = inlined_call_operand.vmem [shape: bf16[2,128,256], index: 5, kind: output, shape index: {}]  }
   0x1   :  { %s1640_s20 = smov 0  }
   0x2 LB: > { %s27_s21 = sadd.s32 1, %s1599_s19  ;;  %p1437_p0 = scmp.ge.s32.totalorder %s1603_s20, 1  ;;  %s1603_s20 = sphi %s1640_s20, %s15_s20   ;;  %s1599_s19 = sphi %s1638_s19, %s1976_s19   ;;  %s1595_s18 = sphi %s1636_s18, %s1975_s18  }
   0x3   : > { %p29_p1 = scmp.ge.s32.totalorder %s27_s21, 2  ;;  %p208_p2 = scmp.lt.s32.totalorder %s1603_s20, 3 }
   0x5   : > { %s1978_s21 = smov (%p29_p1, %s27_s21), 0  ;;  %p209_p3 = pnand %p1437_p0, %p208_p2 }
   0x6   : > { %p245_p4 = scmp.lt.s32.totalorder (!%p209_p3), %s1595_s18, 1  ;;  %v1605_v0 = vmov (!%p209_p3), 0   ;;  %v265_v1 = vld [vmem:[%s1973_s4] sm:$0xff] (!%p209_p3)  ;;  %v267_v2 = vld [vmem:[%s1973_s4 + $0x10] sm:$0xff] (!%p209_p3)  ;;  %v266_v3 = vld [vmem:[%s1973_s4 + $0x8] sm:$0xff] (!%p209_p3)  ;;  %vm504_vm0 = vcmask (!%p209_p3), 1041408  }
   0x7   : > { %212 = sbr.rel (%p209_p3) target bundleno = 853 (0x355), region = 40  ;;  %543 = vmatprep.mubr.bf16.mxu0 (!%p209_p3), %v1605_v0  ;;  %583 = vmatprep.mubr.bf16.mxu1 (!%p209_p3), %v1605_v0  ;;  %v268_v4 = vld [vmem:[%s1973_s4 + $0x18] sm:$0xff] (!%p209_p3)  ;;  %v269_v6 = vld [vmem:[%s1973_s4 + $0x20] sm:$0xff] (!%p209_p3)  ;;  %v270_v10 = vld [vmem:[%s1973_s4 + $0x28] sm:$0xff] (!%p209_p3)  ;;  %vm479_vm1 = vcmask (!%p209_p3), 293888  }
   0x8   : > { %1547 = vset.pattern.permute.xlu0 (!%p209_p3), %v1605_v0  ;;  %1548 = vset.pattern.permute.xlu1 (!%p209_p3), %v1605_v0  ;;  %v271_v14 = vld [vmem:[%s1973_s4 + $0x30] sm:$0xff] (!%p209_p3)  ;;  %v272_v15 = vld [vmem:[%s1973_s4 + $0x38] sm:$0xff] (!%p209_p3)  ;;  %v1557_v17 = vld [vmem:[%s1970_s1] sm:$0xff] (!%p209_p3)  }
   0x9   : > { %336 = vperm.xlu0 (!%p209_p3), %1547, %v265_v1   ;;  %346 = vperm.xlu1 (!%p209_p3), %1548, %v267_v2   ;;  %v1558_v18 = vld [vmem:[%s1970_s1 + $0x20] sm:$0xff] (!%p209_p3)   ;;  %v274_v20 = vld [vmem:[%s1973_s4 + $0x48] sm:$0xff] (!%p209_p3)  ;;  %v275_v21 = vld [vmem:[%s1973_s4 + $0x50] sm:$0xff] (!%p209_p3) }
   0xa   : > { %v273_v19 = vld [vmem:[%s1973_s4 + $0x40] sm:$0xff] (!%p209_p3)  ;;  %v276_v22 = vld [vmem:[%s1973_s4 + $0x58] sm:$0xff] (!%p209_p3)  ;;  %v1559_v23 = vld [vmem:[%s1970_s1 + $0x8] sm:$0xff] (!%p209_p3)  }
   0xb   : > { %v1560_v24 = vld [vmem:[%s1970_s1 + $0x28] sm:$0xff] (!%p209_p3)   ;;  %v277_v25 = vld [vmem:[%s1973_s4 + $0x60] sm:$0xff] (!%p209_p3)  ;;  %v279_v27 = vld [vmem:[%s1973_s4 + $0x70] sm:$0xff] (!%p209_p3) }
   0xc   : > { %v278_v26 = vld [vmem:[%s1973_s4 + $0x68] sm:$0xff] (!%p209_p3)  ;;  %v280_v28 = vld [vmem:[%s1973_s4 + $0x78] sm:$0xff] (!%p209_p3)  ;;  %v1561_v29 = vld [vmem:[%s1970_s1 + $0x10] sm:$0xff] (!%p209_p3)  }
   0xd   : > { %341 = vperm.xlu0 (!%p209_p3), %1547, %v266_v3   ;;  %351 = vperm.xlu1 (!%p209_p3), %1548, %v268_v4   ;;  %v1562_v30 = vld [vmem:[%s1970_s1 + $0x30] sm:$0xff] (!%p209_p3)   ;;  %v281_v31 = vld [vmem:[%s1973_s4 + $0x80] sm:$0xff] (!%p209_p3)  ;;  %v282_v32 = vld [vmem:[%s1973_s4 + $0x88] sm:$0xff] (!%p209_p3) }
   0xe   : > { %s1980_s18 = smov (!%p245_p4, %s1595_s18), 1  ;;  %v283_v33 = vld [vmem:[%s1973_s4 + $0x90] sm:$0xff]  ;;  %v284_v34 = vld [vmem:[%s1973_s4 + $0x98] sm:$0xff]  ;;  %v285_v37 = vld [vmem:[%s1973_s4 + $0xa0] sm:$0xff] }
   0xf   : > { %s1521_s26 = smul.u32 40, %s1980_s18  ;;  %v1563_v35 = vld [vmem:[%s1970_s1 + $0x18] sm:$0xff]   ;;  %v286_v38 = vld [vmem:[%s1973_s4 + $0xa8] sm:$0xff]  ;;  %v287_v39 = vld [vmem:[%s1973_s4 + $0xb0] sm:$0xff]  ;;  %s1498_s23 = sshll.u32 %s1980_s18, 7 }
  0x10   : > { %v1564_v36 = vld [vmem:[%s1970_s1 + $0x38] sm:$0xff]   ;;  %v289_v41 = vld [vmem:[%s1973_s4 + $0xc0] sm:$0xff]  ;;  %v290_v42 = vld [vmem:[%s1973_s4 + $0xc8] sm:$0xff] }
  0x11   : > { %s252_s8 = scalar_lea.vmem %s1969_s0, %s1521_s26  ;;  %356 = vperm.xlu0 %1547, %v269_v6   ;;  %361 = vperm.xlu1 %1548, %v270_v10   ;;  %v288_v40 = vld [vmem:[%s1973_s4 + $0xb8] sm:$0xff]  ;;  %v291_v43 = vld [vmem:[%s1973_s4 + $0xd0] sm:$0xff]  ;;  %v293_v45 = vld [vmem:[%s1973_s4 + $0xe0] sm:$0xff]  ;;  %s1942_s26 = scalar_lea.vmem %s1974_s5, %s1498_s23 }
  0x12   : > { %v1549_v5 = vld [vmem:[%s252_s8 + $0x4] ss:$8 sps:$4 sm:$0xff]   ;;  %v1551_v7 = vld [vmem:[%s252_s8] ss:$8 sps:$4 sm:$0xff]   ;;  %v1552_v8 = vld [vmem:[%s252_s8 + $0x14] ss:$8 sps:$4 sm:$0xff]  }
  0x13   : > { %511 = vmatprep.subr.bf16.mxu0 %v1549_v5  ;;  %1515 = vmatprep.subr.bf16.mxu1 %v1549_v5  ;;  %v317_v9 = vld [vmem:[%s252_s8 + $0x20] sm:$0x33]  ;;  %v1554_v11 = vld [vmem:[%s252_s8 + $0x10] ss:$8 sps:$4 sm:$0xff]   ;;  %v294_v46 = vld [vmem:[%s1973_s4 + $0xe8] sm:$0xff] }
  0x14   : > { %512 = vmatpush1.bf16.msra.mxu0 %v1551_v7  ;;  %1518 = vmatpush1.bf16.msra.mxu1 %v1551_v7  ;;  %v1454_v12 = vcombine.high %v317_v9, %v317_v9  ;;  %v1453_v13 = vcombine.low %v317_v9, %v317_v9  ;;  %v292_v44 = vld [vmem:[%s1973_s4 + $0xd8] sm:$0xff]  ;;  %v295_v47 = vld [vmem:[%s1973_s4 + $0xf0] sm:$0xff]  ;;  %v297_v49 = vld [vmem:[%s1973_s4 + $0x100] sm:$0xff] }
  0x15   : > { %513 = vmatprep.subr.bf16.mxu0 %v1552_v8  ;;  %1516 = vmatprep.subr.bf16.mxu1 %v1552_v8  ;;  %v296_v48 = vld [vmem:[%s1973_s4 + $0xf8] sm:$0xff]  ;;  %v298_v50 = vld [vmem:[%s1973_s4 + $0x108] sm:$0xff]  ;;  %v299_v51 = vld [vmem:[%s1973_s4 + $0x110] sm:$0xff] }
  0x16   : > { %v506_v16 = vsel %vm504_vm0, %v1453_v13, 0  ;;  %366 = vperm.xlu0 %1547, %v271_v14   ;;  %371 = vperm.xlu1 %1548, %v272_v15   ;;  %v300_v52 = vld [vmem:[%s1973_s4 + $0x118] sm:$0xff]  ;;  %v301_v53 = vld [vmem:[%s1973_s4 + $0x120] sm:$0xff]  ;;  %v302_v54 = vld [vmem:[%s1973_s4 + $0x128] sm:$0xff] }
  0x17   : > { %v303_v55 = vld [vmem:[%s1973_s4 + $0x130] sm:$0xff]  ;;  %v304_v56 = vld [vmem:[%s1973_s4 + $0x138] sm:$0xff]  ;;  %v305_v57 = vld [vmem:[%s1973_s4 + $0x140] sm:$0xff] }
  0x18   : > { %514 = vmatpush1.bf16.msra.mxu0 %v1554_v11  ;;  %1519 = vmatpush1.bf16.msra.mxu1 %v1554_v11  ;;  %v306_v58 = vld [vmem:[%s1973_s4 + $0x148] sm:$0xff]  ;;  %v307_v59 = vld [vmem:[%s1973_s4 + $0x150] sm:$0xff]  ;;  %v308_v60 = vld [vmem:[%s1973_s4 + $0x158] sm:$0xff] }
  0x19   : > { %1455 = vmatprep.subr.msk.bf16.mxu0 %vm504_vm0, %v1454_v12  ;;  %1517 = vmatprep.subr.msk.bf16.mxu1 %vm504_vm0, %v1454_v12  ;;  %v309_v61 = vld [vmem:[%s1973_s4 + $0x160] sm:$0xff]  ;;  %v310_v62 = vld [vmem:[%s1973_s4 + $0x168] sm:$0xff]  ;;  %v311_v63 = vld [vmem:[%s1973_s4 + $0x170] sm:$0xff] }
  0x1a   : > { %376 = vperm.xlu0 %1547, %v273_v19   ;;  %381 = vperm.xlu1 %1548, %v274_v20   ;;  %v312_v1 = vld [vmem:[%s1973_s4 + $0x178] sm:$0xff] }
  0x1c   : > { %516 = vmatpush1.bf16.msra.mxu0 %v506_v16  ;;  %1520 = vmatpush1.bf16.msra.mxu1 %v506_v16 }
  0x1e   : > { %386 = vperm.xlu0 %1547, %v275_v21   ;;  %391 = vperm.xlu1 %1548, %v276_v22  }
  0x1f   : > { %1456 = vmatmul.mubr.msk.bf16.vlgmr.msra.gmra.mrb[0].mxu0 %vm479_vm1, %v1557_v17  ;;  %1460 = vmatmul.mubr.msk.bf16.vlgmr.msra.gmra.mrb[0].mxu1 %vm479_vm1, %v1558_v18 }
  0x20   : > { %553 = vmatprep.mubr.bf16.mxu0 %v1605_v0  ;;  %593 = vmatprep.mubr.bf16.mxu1 %v1605_v0 }
  0x22   : > { %396 = vperm.xlu0 %1547, %v277_v25   ;;  %401 = vperm.xlu1 %1548, %v278_v26  }
  0x26   : > { %406 = vperm.xlu0 %1547, %v279_v27   ;;  %411 = vperm.xlu1 %1548, %v280_v28  }
  0x27   : > { %1457 = vmatmul.mubr.msk.bf16.gmra.mrb[4].mxu0 %vm479_vm1, %v1559_v23  ;;  %1461 = vmatmul.mubr.msk.bf16.gmra.mrb[4].mxu1 %vm479_vm1, %v1560_v24 }
  0x28   : > { %563 = vmatprep.mubr.bf16.mxu0 %v1605_v0  ;;  %603 = vmatprep.mubr.bf16.mxu1 %v1605_v0 }
  0x2a   : > { %690 = vperm.xlu0 %1547, %v281_v31   ;;  %695 = vperm.xlu1 %1548, %v282_v32  }
  0x2e   : > { %700 = vperm.xlu0 %1547, %v283_v33   ;;  %705 = vperm.xlu1 %1548, %v284_v34  }
  0x2f   : > { %1458 = vmatmul.mubr.msk.bf16.gmra.mrb[8].mxu0 %vm479_vm1, %v1561_v29  ;;  %1462 = vmatmul.mubr.msk.bf16.gmra.mrb[8].mxu1 %vm479_vm1, %v1562_v30 }
  0x30   : > { %573 = vmatprep.mubr.bf16.mxu0 %v1605_v0  ;;  %613 = vmatprep.mubr.bf16.mxu1 %v1605_v0 }
  0x32   : > { %710 = vperm.xlu0 %1547, %v285_v37   ;;  %715 = vperm.xlu1 %1548, %v286_v38  }
  0x36   : > { %720 = vperm.xlu0 %1547, %v287_v39   ;;  %725 = vperm.xlu1 %1548, %v288_v40  }
  0x37   : > { %1459 = vmatmul.mubr.msk.bf16.gmra.mrb[12].mxu0 %vm479_vm1, %v1563_v35  ;;  %1463 = vmatmul.mubr.msk.bf16.gmra.mrb[12].mxu1 %vm479_vm1, %v1564_v36 }
  0x38   : > { %848 = vmatprep.mubr.bf16.mxu1 %v1605_v0  ;;  %1153 = vmatprep.mubr.bf16.mxu0 %v1605_v0 }
  0x3a   : > { %730 = vperm.xlu0 %1547, %v289_v41   ;;  %735 = vperm.xlu1 %1548, %v290_v42  }
  0x3e   : > { %740 = vperm.xlu0 %1547, %v291_v43   ;;  %745 = vperm.xlu1 %1548, %v292_v44  }
  0x42   : > { %750 = vperm.xlu0 %1547, %v293_v45   ;;  %755 = vperm.xlu1 %1548, %v294_v46  }
  0x46   : > { %760 = vperm.xlu0 %1547, %v295_v47   ;;  %765 = vperm.xlu1 %1548, %v296_v48  }
  0x4a   : > { %995 = vperm.xlu0 %1547, %v297_v49   ;;  %1000 = vperm.xlu1 %1548, %v298_v50  }
  0x4e   : > { %1005 = vperm.xlu0 %1547, %v299_v51   ;;  %1010 = vperm.xlu1 %1548, %v300_v52  }
  0x52   : > { %1015 = vperm.xlu0 %1547, %v301_v53   ;;  %1020 = vperm.xlu1 %1548, %v302_v54  }
  0x56   : > { %1025 = vperm.xlu0 %1547, %v303_v55   ;;  %1030 = vperm.xlu1 %1548, %v304_v56  }
  0x5a   : > { %1035 = vperm.xlu0 %1547, %v305_v57   ;;  %1040 = vperm.xlu1 %1548, %v306_v58  }
  0x5e   : > { %1045 = vperm.xlu0 %1547, %v307_v59   ;;  %1050 = vperm.xlu1 %1548, %v308_v60  }
  0x62   : > { %1055 = vperm.xlu0 %1547, %v309_v61   ;;  %1060 = vperm.xlu1 %1548, %v310_v62  }
  0x66   : > { %1065 = vperm.xlu0 %1547, %v311_v63   ;;  %1070 = vperm.xlu1 %1548, %v312_v1  }
  0x88   : > { %v337_v2 = vpop.permute.xlu0 %336  ;;  %v347_v3 = vpop.permute.xlu1 %346 }
  0x8c   : > { %v342_v4 = vpop.permute.xlu0 %341  ;;  %v352_v5 = vpop.permute.xlu1 %351 }
  0x90   : > { %v1848_v6 = vpop.permute.xlu0 %356  ;;  %v1850_v7 = vpop.permute.xlu1 %361 }
  0x95   : > { %v1852_v8 = vpop.permute.xlu0 %366  ;;  %v1854_v9 = vpop.permute.xlu1 %371 }
  0x99   : > { %v377_v10 = vpop.permute.xlu0 %376  ;;  %v382_v11 = vpop.permute.xlu1 %381 }
  0x9d   : > { %v387_v36 = vpop.permute.xlu0 %386  ;;  %v392_v37 = vpop.permute.xlu1 %391 }
  0xf2   : > { %v545_v12 = vpop.f32.mrb[0].mxu0  ;;  %v585_v13 = vpop.f32.mrb[0].mxu1 }
  0xf3   : > { %v546_v14 = vadd.f32 %v545_v12, %v337_v2  ;;  %v547_v15 = vpop.f32.mrb[1].mxu0  ;;  %v586_v16 = vadd.f32 %v585_v13, %v377_v10  ;;  %v587_v17 = vpop.f32.mrb[1].mxu1 }
  0xf4   : > { %v548_v18 = vadd.f32 %v547_v15, %v337_v2  ;;  %v549_v19 = vpop.f32.mrb[2].mxu0  ;;  %v588_v20 = vadd.f32 %v587_v17, %v377_v10  ;;  %v589_v21 = vpop.f32.mrb[2].mxu1 }
  0xf5   : > { %v550_v22 = vadd.f32 %v549_v19, %v342_v4  ;;  %v551_v23 = vpop.f32.mrb[3].mxu0  ;;  %v640_v24 = vmax.f32 %v586_v16, 0.0  ;;  %v590_v25 = vadd.f32 %v589_v21, %v382_v11  ;;  %v591_v26 = vpop.f32.mrb[3].mxu1  ;;  %v624_v30 = vmax.f32 %v546_v14, 0.0 }
  0xf6   : > { %v552_v27 = vadd.f32 %v551_v23, %v342_v4  ;;  %v641_v28 = vmax.f32 %v588_v20, 0.0  ;;  %v592_v29 = vadd.f32 %v591_v26, %v382_v11  ;;  %v625_v33 = vmax.f32 %v548_v18, 0.0  ;;  %v402_v4 = vpop.permute.xlu1 %401 }
  0xf7   : > { %v626_v31 = vmax.f32 %v550_v22, 0.0  ;;  %v642_v32 = vmax.f32 %v590_v25, 0.0 }
  0xf8   : > { %v627_v34 = vmax.f32 %v552_v27, 0.0  ;;  %v643_v35 = vmax.f32 %v592_v29, 0.0 }
  0xf9   : > { %v672_v38 = vpack.c.bf16 %v626_v31, %v624_v30  ;;  %v1856_v39 = vpack.c.bf16 %v642_v32, %v640_v24 }
  0xfa   : > { %v673_v40 = vpack.c.bf16 %v627_v34, %v625_v33  ;;  %v1858_v41 = vpack.c.bf16 %v643_v35, %v641_v28  ;;  %v555_v42 = vpop.f32.mrb[4].mxu0  ;;  %v595_v43 = vpop.f32.mrb[4].mxu1 }
  0xfb   : > { %v556_v44 = vadd.f32 %v555_v42, %v347_v3  ;;  %v596_v45 = vadd.f32 %v595_v43, %v387_v36  ;;  %v557_v46 = vpop.f32.mrb[5].mxu0  ;;  %v597_v47 = vpop.f32.mrb[5].mxu1 }
  0xfc   : > { %v558_v48 = vadd.f32 %v557_v46, %v347_v3  ;;  %v598_v49 = vadd.f32 %v597_v47, %v387_v36  ;;  %v559_v50 = vpop.f32.mrb[6].mxu0  ;;  %v599_v51 = vpop.f32.mrb[6].mxu1  ;;  %816 = vmatprep.subr.bf16.mxu1 %v673_v40 }
  0xfd   : > { %v644_v52 = vmax.f32 %v596_v45, 0.0  ;;  %v560_v53 = vadd.f32 %v559_v50, %v352_v5  ;;  %v600_v54 = vadd.f32 %v599_v51, %v392_v37  ;;  %v561_v55 = vpop.f32.mrb[7].mxu0  ;;  %v601_v56 = vpop.f32.mrb[7].mxu1  ;;  %817 = vmatpush1.bf16.msra.mxu1 %v672_v38  ;;  %v628_v60 = vmax.f32 %v556_v44, 0.0 }
  0xfe   : > { %v645_v57 = vmax.f32 %v598_v49, 0.0  ;;  %v562_v58 = vadd.f32 %v561_v55, %v352_v5  ;;  %v602_v59 = vadd.f32 %v601_v56, %v392_v37  ;;  %v629_v63 = vmax.f32 %v558_v48, 0.0  ;;  %v397_v3 = vpop.permute.xlu0 %396  ;;  %v412_v37 = vpop.permute.xlu1 %411 }
  0xff   : > { %v630_v61 = vmax.f32 %v560_v53, 0.0  ;;  %v646_v62 = vmax.f32 %v600_v54, 0.0 }
 0x100   : > { %v631_v1 = vmax.f32 %v562_v58, 0.0  ;;  %v647_v2 = vmax.f32 %v602_v59, 0.0 }
 0x101   : > { %v674_v10 = vpack.c.bf16 %v630_v61, %v628_v60  ;;  %v1860_v11 = vpack.c.bf16 %v646_v62, %v644_v52 }
 0x102   : > { %v675_v12 = vpack.c.bf16 %v631_v1, %v629_v63  ;;  %v1862_v13 = vpack.c.bf16 %v647_v2, %v645_v57  ;;  %v565_v14 = vpop.f32.mrb[8].mxu0  ;;  %v605_v15 = vpop.f32.mrb[8].mxu1 }
 0x103   : > { %v566_v16 = vadd.f32 %v565_v14, %v1848_v6  ;;  %v606_v5 = vadd.f32 %v605_v15, %v397_v3  ;;  %v567_v17 = vpop.f32.mrb[9].mxu0  ;;  %v607_v18 = vpop.f32.mrb[9].mxu1  ;;  %v1570_v14 = vld [vmem:[%s1971_s2 + $0x28] sm:$0xff]   ;;  %v1571_v15 = vld [vmem:[%s1971_s2 + $0x30] sm:$0xff]  }
 0x104   : > { %v568_v19 = vadd.f32 %v567_v17, %v1848_v6  ;;  %v608_v20 = vadd.f32 %v607_v18, %v397_v3  ;;  %v569_v21 = vpop.f32.mrb[10].mxu0  ;;  %v609_v22 = vpop.f32.mrb[10].mxu1  ;;  %818 = vmatprep.subr.bf16.mxu1 %v675_v12 }
 0x105   : > { %v570_v23 = vadd.f32 %v569_v21, %v1850_v7  ;;  %v610_v24 = vadd.f32 %v609_v22, %v402_v4  ;;  %v571_v25 = vpop.f32.mrb[11].mxu0  ;;  %v611_v26 = vpop.f32.mrb[11].mxu1  ;;  %819 = vmatpush1.bf16.msra.mxu1 %v674_v10  ;;  %v632_v29 = vmax.f32 %v566_v16, 0.0  ;;  %v648_v30 = vmax.f32 %v606_v5, 0.0  ;;  %v1572_v16 = vld [vmem:[%s1971_s2 + $0x38] sm:$0xff]  }
 0x106   : > { %v572_v27 = vadd.f32 %v571_v25, %v1850_v7  ;;  %v612_v28 = vadd.f32 %v611_v26, %v402_v4  ;;  %v633_v33 = vmax.f32 %v568_v19, 0.0  ;;  %v649_v34 = vmax.f32 %v608_v20, 0.0  ;;  %v407_v36 = vpop.permute.xlu0 %406  ;;  %v696_v20 = vpop.permute.xlu1 %695 }
 0x107   : > { %v634_v31 = vmax.f32 %v570_v23, 0.0  ;;  %v650_v32 = vmax.f32 %v610_v24, 0.0 }
 0x108   : > { %v635_v6 = vmax.f32 %v572_v27, 0.0  ;;  %v651_v35 = vmax.f32 %v612_v28, 0.0 }
 0x109   : > { %v676_v38 = vpack.c.bf16 %v634_v31, %v632_v29  ;;  %v684_v40 = vpack.c.bf16 %v650_v32, %v648_v30 }
 0x10a   : > { %v677_v42 = vpack.c.bf16 %v635_v6, %v633_v33  ;;  %v685_v43 = vpack.c.bf16 %v651_v35, %v649_v34  ;;  %v575_v44 = vpop.f32.mrb[12].mxu0  ;;  %v615_v45 = vpop.f32.mrb[12].mxu1 }
 0x10b   : > { %v576_v46 = vadd.f32 %v575_v44, %v1852_v8  ;;  %v616_v7 = vadd.f32 %v615_v45, %v407_v36  ;;  %v577_v47 = vpop.f32.mrb[13].mxu0  ;;  %v617_v48 = vpop.f32.mrb[13].mxu1 }
 0x10c   : > { %v578_v49 = vadd.f32 %v577_v47, %v1852_v8  ;;  %v618_v50 = vadd.f32 %v617_v48, %v407_v36  ;;  %v579_v51 = vpop.f32.mrb[14].mxu0  ;;  %v619_v52 = vpop.f32.mrb[14].mxu1  ;;  %820 = vmatprep.subr.bf16.mxu1 %v677_v42 }
 0x10d   : > { %v580_v53 = vadd.f32 %v579_v51, %v1854_v9  ;;  %v620_v54 = vadd.f32 %v619_v52, %v412_v37  ;;  %v581_v55 = vpop.f32.mrb[15].mxu0  ;;  %v621_v56 = vpop.f32.mrb[15].mxu1  ;;  %821 = vmatpush1.bf16.msra.mxu1 %v676_v38  ;;  %v636_v59 = vmax.f32 %v576_v46, 0.0  ;;  %v652_v60 = vmax.f32 %v616_v7, 0.0 }
 0x10e   : > { %v582_v57 = vadd.f32 %v581_v55, %v1854_v9  ;;  %v622_v58 = vadd.f32 %v621_v56, %v412_v37  ;;  %v637_v63 = vmax.f32 %v578_v49, 0.0  ;;  %v653_v1 = vmax.f32 %v618_v50, 0.0  ;;  %v1565_v9 = vld [vmem:[%s1971_s2] sm:$0xff]   ;;  %v691_v5 = vpop.permute.xlu0 %690  ;;  %v706_v35 = vpop.permute.xlu1 %705 }
 0x10f   : > { %v638_v61 = vmax.f32 %v580_v53, 0.0  ;;  %v654_v62 = vmax.f32 %v620_v54, 0.0 }
 0x110   : > { %v639_v8 = vmax.f32 %v582_v57, 0.0  ;;  %v655_v2 = vmax.f32 %v622_v58, 0.0 }
 0x111   : > { %v678_v3 = vpack.c.bf16 %v638_v61, %v636_v59  ;;  %v686_v4 = vpack.c.bf16 %v654_v62, %v652_v60 }
 0x112   : > { %v679_v10 = vpack.c.bf16 %v639_v8, %v637_v63  ;;  %v687_v12 = vpack.c.bf16 %v655_v2, %v653_v1  ;;  %v701_v31 = vpop.permute.xlu0 %700  ;;  %v716_v52 = vpop.permute.xlu1 %715 }
 0x114   : > { %822 = vmatprep.subr.bf16.mxu1 %v679_v10 }
 0x115   : > { %823 = vmatpush1.bf16.msra.mxu1 %v678_v3 }
 0x116   : > { %824 = vmatprep.subr.bf16.mxu1 %v1858_v41  ;;  %v1566_v41 = vld [vmem:[%s1971_s2 + $0x8] sm:$0xff]   ;;  %v711_v47 = vpop.permute.xlu0 %710 }
 0x119   : > { %825 = vmatpush1.bf16.msra.mxu1 %v1856_v39  ;;  %v1567_v39 = vld [vmem:[%s1971_s2 + $0x10] sm:$0xff]  }
 0x11a   : > { %826 = vmatprep.subr.bf16.mxu1 %v1862_v13  ;;  %v1569_v13 = vld [vmem:[%s1971_s2 + $0x20] sm:$0xff]   ;;  %v721_v63 = vpop.permute.xlu0 %720 }
 0x11d   : > { %827 = vmatpush1.bf16.msra.mxu1 %v1860_v11  ;;  %v1568_v11 = vld [vmem:[%s1971_s2 + $0x18] sm:$0xff]  }
 0x11e   : > { %828 = vmatprep.subr.bf16.mxu1 %v685_v43 }
 0x121   : > { %829 = vmatpush1.bf16.msra.mxu1 %v684_v40 }
 0x122   : > { %830 = vmatprep.subr.bf16.mxu1 %v687_v12 }
 0x125   : > { %831 = vmatpush1.bf16.msra.mxu1 %v686_v4  ;;  %v726_v4 = vpop.permute.xlu1 %725 }
 0x128   : > { %849 = vmatmul.mubr.bf16.vlgmr.msra.gmra.mrb[16].mxu1 %v1565_v9 }
 0x129   : > { %858 = vmatprep.mubr.bf16.mxu1 %v1605_v0 }
 0x130   : > { %859 = vmatmul.mubr.bf16.gmra.mrb[20].mxu1 %v1566_v41 }
 0x131   : > { %868 = vmatprep.mubr.bf16.mxu1 %v1605_v0 }
 0x138   : > { %869 = vmatmul.mubr.bf16.gmra.mrb[24].mxu1 %v1567_v39 }
 0x139   : > { %878 = vmatprep.mubr.bf16.mxu1 %v1605_v0 }
 0x140   : > { %879 = vmatmul.mubr.bf16.gmra.mrb[28].mxu1 %v1568_v11 }
 0x141   : > { %888 = vmatprep.mubr.bf16.mxu1 %v1605_v0 }
 0x148   : > { %889 = vmatmul.mubr.bf16.gmra.mrb[32].mxu1 %v1569_v13 }
 0x149   : > { %898 = vmatprep.mubr.bf16.mxu1 %v1605_v0 }
 0x150   : > { %899 = vmatmul.mubr.bf16.gmra.mrb[36].mxu1 %v1570_v14 }
 0x151   : > { %908 = vmatprep.mubr.bf16.mxu1 %v1605_v0 }
 0x158   : > { %909 = vmatmul.mubr.bf16.gmra.mrb[40].mxu1 %v1571_v15 }
 0x159   : > { %918 = vmatprep.mubr.bf16.mxu1 %v1605_v0 }
 0x160   : > { %919 = vmatmul.mubr.bf16.gmra.mrb[44].mxu1 %v1572_v16 }
 0x1fb   : > { %v850_v17 = vpop.f32.mrb[16].mxu1 }
 0x1fc   : > { %v851_v18 = vadd.f32 %v850_v17, %v691_v5  ;;  %v852_v19 = vpop.f32.mrb[17].mxu1 }
 0x1fd   : > { %v853_v21 = vadd.f32 %v852_v19, %v691_v5  ;;  %v854_v22 = vpop.f32.mrb[18].mxu1  ;;  %v731_v5 = vpop.permute.xlu0 %730 }
 0x1fe   : > { %v855_v23 = vadd.f32 %v854_v22, %v696_v20  ;;  %v856_v24 = vpop.f32.mrb[19].mxu1  ;;  %v929_v26 = vmax.f32 %v851_v18, 0.0 }
 0x1ff   : > { %v857_v25 = vadd.f32 %v856_v24, %v696_v20  ;;  %v930_v28 = vmax.f32 %v853_v21, 0.0  ;;  %v736_v21 = vpop.permute.xlu1 %735 }
 0x200   : > { %v931_v27 = vmax.f32 %v855_v23, 0.0 }
 0x201   : > { %v932_v29 = vmax.f32 %v857_v25, 0.0 }
 0x202   : > { %v977_v30 = vpack.c.bf16 %v931_v27, %v929_v26 }
 0x203   : > { %v978_v32 = vpack.c.bf16 %v932_v29, %v930_v28  ;;  %v860_v33 = vpop.f32.mrb[20].mxu1 }
 0x204   : > { %v861_v34 = vadd.f32 %v860_v33, %v701_v31  ;;  %v862_v6 = vpop.f32.mrb[21].mxu1 }
 0x205   : > { %v863_v36 = vadd.f32 %v862_v6, %v701_v31  ;;  %v864_v37 = vpop.f32.mrb[22].mxu1  ;;  %1121 = vmatprep.subr.bf16.mxu0 %v978_v32  ;;  %v741_v32 = vpop.permute.xlu0 %740 }
 0x206   : > { %v865_v38 = vadd.f32 %v864_v37, %v706_v35  ;;  %v866_v40 = vpop.f32.mrb[23].mxu1  ;;  %1122 = vmatpush1.bf16.msra.mxu0 %v977_v30  ;;  %v933_v43 = vmax.f32 %v861_v34, 0.0 }
 0x207   : > { %v867_v42 = vadd.f32 %v866_v40, %v706_v35  ;;  %v934_v45 = vmax.f32 %v863_v36, 0.0  ;;  %v746_v36 = vpop.permute.xlu1 %745 }
 0x208   : > { %v935_v44 = vmax.f32 %v865_v38, 0.0 }
 0x209   : > { %v936_v46 = vmax.f32 %v867_v42, 0.0 }
 0x20a   : > { %v979_v7 = vpack.c.bf16 %v935_v44, %v933_v43 }
 0x20b   : > { %v980_v48 = vpack.c.bf16 %v936_v46, %v934_v45  ;;  %v870_v49 = vpop.f32.mrb[24].mxu1 }
 0x20c   : > { %v871_v50 = vadd.f32 %v870_v49, %v711_v47  ;;  %v872_v51 = vpop.f32.mrb[25].mxu1 }
 0x20d   : > { %v873_v53 = vadd.f32 %v872_v51, %v711_v47  ;;  %v874_v54 = vpop.f32.mrb[26].mxu1  ;;  %1123 = vmatprep.subr.bf16.mxu0 %v980_v48  ;;  %v751_v48 = vpop.permute.xlu0 %750 }
 0x20e   : > { %v875_v55 = vadd.f32 %v874_v54, %v716_v52  ;;  %v876_v56 = vpop.f32.mrb[27].mxu1  ;;  %1124 = vmatpush1.bf16.msra.mxu0 %v979_v7  ;;  %v937_v58 = vmax.f32 %v871_v50, 0.0 }
 0x20f   : > { %v877_v57 = vadd.f32 %v876_v56, %v716_v52  ;;  %v938_v60 = vmax.f32 %v873_v53, 0.0  ;;  %v756_v53 = vpop.permute.xlu1 %755 }
 0x210   : > { %v939_v59 = vmax.f32 %v875_v55, 0.0 }
 0x211   : > { %v940_v61 = vmax.f32 %v877_v57, 0.0 }
 0x212   : > { %v981_v62 = vpack.c.bf16 %v939_v59, %v937_v58 }
 0x213   : > { %v982_v1 = vpack.c.bf16 %v940_v61, %v938_v60  ;;  %v880_v8 = vpop.f32.mrb[28].mxu1 }
 0x214   : > { %v881_v2 = vadd.f32 %v880_v8, %v721_v63  ;;  %v882_v3 = vpop.f32.mrb[29].mxu1 }
 0x215   : > { %v883_v10 = vadd.f32 %v882_v3, %v721_v63  ;;  %v884_v12 = vpop.f32.mrb[30].mxu1  ;;  %1125 = vmatprep.subr.bf16.mxu0 %v982_v1  ;;  %v761_v1 = vpop.permute.xlu0 %760 }
 0x216   : > { %v885_v9 = vadd.f32 %v884_v12, %v726_v4  ;;  %v886_v41 = vpop.f32.mrb[31].mxu1  ;;  %1126 = vmatpush1.bf16.msra.mxu0 %v981_v62  ;;  %v941_v11 = vmax.f32 %v881_v2, 0.0 }
 0x217   : > { %v887_v39 = vadd.f32 %v886_v41, %v726_v4  ;;  %v942_v14 = vmax.f32 %v883_v10, 0.0  ;;  %v766_v10 = vpop.permute.xlu1 %765 }
 0x218   : > { %v943_v13 = vmax.f32 %v885_v9, 0.0 }
 0x219   : > { %v944_v15 = vmax.f32 %v887_v39, 0.0 }
 0x21a   : > { %v983_v16 = vpack.c.bf16 %v943_v13, %v941_v11 }
 0x21b   : > { %v984_v17 = vpack.c.bf16 %v944_v15, %v942_v14  ;;  %v890_v18 = vpop.f32.mrb[32].mxu1 }
 0x21c   : > { %v891_v19 = vadd.f32 %v890_v18, %v731_v5  ;;  %v892_v20 = vpop.f32.mrb[33].mxu1  ;;  %v1573_v18 = vld [vmem:[%s1972_s3] sm:$0xff]  }
 0x21d   : > { %v893_v22 = vadd.f32 %v892_v20, %v731_v5  ;;  %v894_v23 = vpop.f32.mrb[34].mxu1  ;;  %1127 = vmatprep.subr.bf16.mxu0 %v984_v17  ;;  %v1575_v20 = vld [vmem:[%s1972_s3 + $0x10] sm:$0xff]  }
 0x21e   : > { %v895_v24 = vadd.f32 %v894_v23, %v736_v21  ;;  %v896_v25 = vpop.f32.mrb[35].mxu1  ;;  %1128 = vmatpush1.bf16.msra.mxu0 %v983_v16  ;;  %v945_v27 = vmax.f32 %v891_v19, 0.0  ;;  %v1574_v19 = vld [vmem:[%s1972_s3 + $0x8] sm:$0xff]  }
 0x21f   : > { %v897_v26 = vadd.f32 %v896_v25, %v736_v21  ;;  %v946_v29 = vmax.f32 %v893_v22, 0.0  ;;  %v1576_v21 = vld [vmem:[%s1972_s3 + $0x18] sm:$0xff]   ;;  %v1577_v22 = vld [vmem:[%s1972_s3 + $0x20] sm:$0xff]   ;;  %v1578_v23 = vld [vmem:[%s1972_s3 + $0x28] sm:$0xff]  }
 0x220   : > { %v947_v28 = vmax.f32 %v895_v24, 0.0  ;;  %v1579_v24 = vld [vmem:[%s1972_s3 + $0x30] sm:$0xff]   ;;  %v1580_v25 = vld [vmem:[%s1972_s3 + $0x38] sm:$0xff]  }
 0x221   : > { %v948_v30 = vmax.f32 %v897_v26, 0.0  ;;  %v996_v26 = vpop.permute.xlu0 %995 }
 0x222   : > { %v985_v31 = vpack.c.bf16 %v947_v28, %v945_v27 }
 0x223   : > { %v986_v33 = vpack.c.bf16 %v948_v30, %v946_v29  ;;  %v900_v34 = vpop.f32.mrb[36].mxu1  ;;  %v1001_v30 = vpop.permute.xlu1 %1000 }
 0x224   : > { %v901_v6 = vadd.f32 %v900_v34, %v741_v32  ;;  %v902_v35 = vpop.f32.mrb[37].mxu1 }
 0x225   : > { %v903_v37 = vadd.f32 %v902_v35, %v741_v32  ;;  %v904_v38 = vpop.f32.mrb[38].mxu1  ;;  %1129 = vmatprep.subr.bf16.mxu0 %v986_v33 }
 0x226   : > { %v905_v40 = vadd.f32 %v904_v38, %v746_v36  ;;  %v906_v42 = vpop.f32.mrb[39].mxu1  ;;  %1130 = vmatpush1.bf16.msra.mxu0 %v985_v31  ;;  %v949_v44 = vmax.f32 %v901_v6, 0.0 }
 0x227   : > { %v907_v43 = vadd.f32 %v906_v42, %v746_v36  ;;  %v950_v46 = vmax.f32 %v903_v37, 0.0  ;;  %v1006_v36 = vpop.permute.xlu0 %1005  ;;  %v1011_v42 = vpop.permute.xlu1 %1010 }
 0x228   : > { %v951_v45 = vmax.f32 %v905_v40, 0.0 }
 0x229   : > { %v952_v7 = vmax.f32 %v907_v43, 0.0 }
 0x22a   : > { %v987_v47 = vpack.c.bf16 %v951_v45, %v949_v44 }
 0x22b   : > { %v988_v49 = vpack.c.bf16 %v952_v7, %v950_v46  ;;  %v910_v50 = vpop.f32.mrb[40].mxu1 }
 0x22c   : > { %v911_v51 = vadd.f32 %v910_v50, %v751_v48  ;;  %v912_v52 = vpop.f32.mrb[41].mxu1 }
 0x22d   : > { %v913_v54 = vadd.f32 %v912_v52, %v751_v48  ;;  %v914_v55 = vpop.f32.mrb[42].mxu1  ;;  %1131 = vmatprep.subr.bf16.mxu0 %v988_v49  ;;  %v1016_v49 = vpop.permute.xlu0 %1015 }
 0x22e   : > { %v915_v56 = vadd.f32 %v914_v55, %v756_v53  ;;  %v916_v57 = vpop.f32.mrb[43].mxu1  ;;  %1132 = vmatpush1.bf16.msra.mxu0 %v987_v47  ;;  %v953_v59 = vmax.f32 %v911_v51, 0.0 }
 0x22f   : > { %v917_v58 = vadd.f32 %v916_v57, %v756_v53  ;;  %v954_v61 = vmax.f32 %v913_v54, 0.0  ;;  %v1021_v53 = vpop.permute.xlu1 %1020 }
 0x230   : > { %v955_v60 = vmax.f32 %v915_v56, 0.0 }
 0x231   : > { %v956_v62 = vmax.f32 %v917_v58, 0.0 }
 0x232   : > { %v989_v63 = vpack.c.bf16 %v955_v60, %v953_v59 }
 0x233   : > { %v990_v8 = vpack.c.bf16 %v956_v62, %v954_v61  ;;  %v920_v2 = vpop.f32.mrb[44].mxu1  ;;  %v1026_v61 = vpop.permute.xlu0 %1025 }
 0x234   : > { %v921_v3 = vadd.f32 %v920_v2, %v761_v1  ;;  %v922_v4 = vpop.f32.mrb[45].mxu1 }
 0x235   : > { %v923_v12 = vadd.f32 %v922_v4, %v761_v1  ;;  %v924_v9 = vpop.f32.mrb[46].mxu1  ;;  %1133 = vmatprep.subr.bf16.mxu0 %v990_v8  ;;  %v1031_v8 = vpop.permute.xlu1 %1030 }
 0x236   : > { %v925_v41 = vadd.f32 %v924_v9, %v766_v10  ;;  %v926_v39 = vpop.f32.mrb[47].mxu1  ;;  %1134 = vmatpush1.bf16.msra.mxu0 %v989_v63  ;;  %v957_v13 = vmax.f32 %v921_v3, 0.0 }
 0x237   : > { %v927_v11 = vadd.f32 %v926_v39, %v766_v10  ;;  %v958_v15 = vmax.f32 %v923_v12, 0.0  ;;  %v1036_v39 = vpop.permute.xlu0 %1035 }
 0x238   : > { %v959_v14 = vmax.f32 %v925_v41, 0.0 }
 0x239   : > { %v960_v16 = vmax.f32 %v927_v11, 0.0 }
 0x23a   : > { %v991_v5 = vpack.c.bf16 %v959_v14, %v957_v13 }
 0x23b   : > { %v992_v17 = vpack.c.bf16 %v960_v16, %v958_v15  ;;  %v1041_v15 = vpop.permute.xlu1 %1040 }
 0x23d   : > { %1135 = vmatprep.subr.bf16.mxu0 %v992_v17 }
 0x23e   : > { %1136 = vmatpush1.bf16.msra.mxu0 %v991_v5 }
 0x241   : > { %1154 = vmatmul.mubr.bf16.vlgmr.msra.gmra.mrb[16].mxu0 %v1573_v18 }
 0x242   : > { %1163 = vmatprep.mubr.bf16.mxu0 %v1605_v0 }
 0x249   : > { %1164 = vmatmul.mubr.bf16.gmra.mrb[20].mxu0 %v1574_v19 }
 0x24a   : > { %1173 = vmatprep.mubr.bf16.mxu0 %v1605_v0 }
 0x251   : > { %1174 = vmatmul.mubr.bf16.gmra.mrb[24].mxu0 %v1575_v20 }
 0x252   : > { %1183 = vmatprep.mubr.bf16.mxu0 %v1605_v0 }
 0x259   : > { %1184 = vmatmul.mubr.bf16.gmra.mrb[28].mxu0 %v1576_v21 }
 0x25a   : > { %1193 = vmatprep.mubr.bf16.mxu0 %v1605_v0 }
 0x261   : > { %1194 = vmatmul.mubr.bf16.gmra.mrb[32].mxu0 %v1577_v22  ;;  %v1046_v22 = vpop.permute.xlu0 %1045 }
 0x262   : > { %1203 = vmatprep.mubr.bf16.mxu0 %v1605_v0 }
 0x269   : > { %1204 = vmatmul.mubr.bf16.gmra.mrb[36].mxu0 %v1578_v23 }
 0x26a   : > { %1213 = vmatprep.mubr.bf16.mxu0 %v1605_v0 }
 0x271   : > { %1214 = vmatmul.mubr.bf16.gmra.mrb[40].mxu0 %v1579_v24 }
 0x272   : > { %1223 = vmatprep.mubr.bf16.mxu0 %v1605_v0 }
 0x279   : > { %1224 = vmatmul.mubr.bf16.gmra.mrb[44].mxu0 %v1580_v25 }
 0x314   : > { %v1155_v27 = vpop.f32.mrb[16].mxu0 }
 0x315   : > { %v1156_v28 = vadd.f32 %v1155_v27, %v996_v26  ;;  %v1157_v29 = vpop.f32.mrb[17].mxu0 }
 0x316   : > { %v1158_v31 = vadd.f32 %v1157_v29, %v996_v26  ;;  %v1159_v32 = vpop.f32.mrb[18].mxu0  ;;  %v1051_v26 = vpop.permute.xlu1 %1050 }
 0x317   : > { %v1160_v0 = vadd.f32 %v1159_v32, %v1001_v30  ;;  %v1161_v33 = vpop.f32.mrb[19].mxu0 }
 0x318   : > { %v1499_v34 = vpack.c.bf16 %v1158_v31, %v1156_v28  ;;  %v1162_v6 = vadd.f32 %v1161_v33, %v1001_v30  ;;  %v1056_v33 = vpop.permute.xlu0 %1055 }
 0x31a   : > { %1330 = vst [vmem:[%s1942_s26] sm:$0xff] %v1499_v34  ;;  %v1500_v35 = vpack.c.bf16 %v1162_v6, %v1160_v0 }
 0x31c   : > { %1331 = vst [vmem:[%s1942_s26 + $0x8] sm:$0xff] %v1500_v35  ;;  %v1165_v37 = vpop.f32.mrb[20].mxu0 }
 0x31d   : > { %v1166_v38 = vadd.f32 %v1165_v37, %v1006_v36  ;;  %v1167_v40 = vpop.f32.mrb[21].mxu0 }
 0x31e   : > { %v1168_v43 = vadd.f32 %v1167_v40, %v1006_v36  ;;  %v1169_v44 = vpop.f32.mrb[22].mxu0  ;;  %v1061_v36 = vpop.permute.xlu1 %1060 }
 0x31f   : > { %v1170_v45 = vadd.f32 %v1169_v44, %v1011_v42  ;;  %v1171_v46 = vpop.f32.mrb[23].mxu0 }
 0x320   : > { %v1501_v7 = vpack.c.bf16 %v1168_v43, %v1166_v38  ;;  %v1172_v47 = vadd.f32 %v1171_v46, %v1011_v42  ;;  %v1066_v46 = vpop.permute.xlu0 %1065 }
 0x322   : > { %1332 = vst [vmem:[%s1942_s26 + $0x10] sm:$0xff] %v1501_v7  ;;  %v1502_v48 = vpack.c.bf16 %v1172_v47, %v1170_v45 }
 0x324   : > { %1333 = vst [vmem:[%s1942_s26 + $0x18] sm:$0xff] %v1502_v48  ;;  %v1175_v50 = vpop.f32.mrb[24].mxu0 }
 0x325   : > { %v1176_v51 = vadd.f32 %v1175_v50, %v1016_v49  ;;  %v1177_v52 = vpop.f32.mrb[25].mxu0 }
 0x326   : > { %v1178_v54 = vadd.f32 %v1177_v52, %v1016_v49  ;;  %v1179_v55 = vpop.f32.mrb[26].mxu0  ;;  %v1071_v49 = vpop.permute.xlu1 %1070 }
 0x327   : > { %v1180_v56 = vadd.f32 %v1179_v55, %v1021_v53  ;;  %v1181_v57 = vpop.f32.mrb[27].mxu0 }
 0x328   : > { %v1503_v58 = vpack.c.bf16 %v1178_v54, %v1176_v51  ;;  %v1182_v59 = vadd.f32 %v1181_v57, %v1021_v53 }
 0x32a   : > { %1334 = vst [vmem:[%s1942_s26 + $0x20] sm:$0xff] %v1503_v58  ;;  %v1504_v60 = vpack.c.bf16 %v1182_v59, %v1180_v56 }
 0x32c   : > { %1335 = vst [vmem:[%s1942_s26 + $0x28] sm:$0xff] %v1504_v60  ;;  %v1185_v62 = vpop.f32.mrb[28].mxu0 }
 0x32d   : > { %v1186_v63 = vadd.f32 %v1185_v62, %v1026_v61  ;;  %v1187_v1 = vpop.f32.mrb[29].mxu0 }
 0x32e   : > { %v1188_v2 = vadd.f32 %v1187_v1, %v1026_v61  ;;  %v1189_v3 = vpop.f32.mrb[30].mxu0 }
 0x32f   : > { %v1190_v4 = vadd.f32 %v1189_v3, %v1031_v8  ;;  %v1191_v10 = vpop.f32.mrb[31].mxu0 }
 0x330   : > { %v1505_v12 = vpack.c.bf16 %v1188_v2, %v1186_v63  ;;  %v1192_v9 = vadd.f32 %v1191_v10, %v1031_v8 }
 0x332   : > { %1336 = vst [vmem:[%s1942_s26 + $0x30] sm:$0xff] %v1505_v12  ;;  %v1506_v41 = vpack.c.bf16 %v1192_v9, %v1190_v4 }
 0x334   : > { %1337 = vst [vmem:[%s1942_s26 + $0x38] sm:$0xff] %v1506_v41  ;;  %v1195_v11 = vpop.f32.mrb[32].mxu0 }
 0x335   : > { %v1196_v13 = vadd.f32 %v1195_v11, %v1036_v39  ;;  %v1197_v14 = vpop.f32.mrb[33].mxu0 }
 0x336   : > { %v1198_v16 = vadd.f32 %v1197_v14, %v1036_v39  ;;  %v1199_v5 = vpop.f32.mrb[34].mxu0 }
 0x337   : > { %v1200_v17 = vadd.f32 %v1199_v5, %v1041_v15  ;;  %v1201_v18 = vpop.f32.mrb[35].mxu0 }
 0x338   : > { %v1507_v19 = vpack.c.bf16 %v1198_v16, %v1196_v13  ;;  %v1202_v20 = vadd.f32 %v1201_v18, %v1041_v15 }
 0x33a   : > { %1338 = vst [vmem:[%s1942_s26 + $0x40] sm:$0xff] %v1507_v19  ;;  %v1508_v21 = vpack.c.bf16 %v1202_v20, %v1200_v17 }
 0x33c   : > { %1339 = vst [vmem:[%s1942_s26 + $0x48] sm:$0xff] %v1508_v21  ;;  %v1205_v23 = vpop.f32.mrb[36].mxu0 }
 0x33d   : > { %v1206_v24 = vadd.f32 %v1205_v23, %v1046_v22  ;;  %v1207_v25 = vpop.f32.mrb[37].mxu0 }
 0x33e   : > { %v1208_v27 = vadd.f32 %v1207_v25, %v1046_v22  ;;  %v1209_v28 = vpop.f32.mrb[38].mxu0 }
 0x33f   : > { %v1210_v29 = vadd.f32 %v1209_v28, %v1051_v26  ;;  %v1211_v30 = vpop.f32.mrb[39].mxu0 }
 0x340   : > { %v1509_v31 = vpack.c.bf16 %v1208_v27, %v1206_v24  ;;  %v1212_v32 = vadd.f32 %v1211_v30, %v1051_v26 }
 0x342   : > { %1340 = vst [vmem:[%s1942_s26 + $0x50] sm:$0xff] %v1509_v31  ;;  %v1510_v0 = vpack.c.bf16 %v1212_v32, %v1210_v29 }
 0x344   : > { %1341 = vst [vmem:[%s1942_s26 + $0x58] sm:$0xff] %v1510_v0  ;;  %v1215_v34 = vpop.f32.mrb[40].mxu0 }
 0x345   : > { %v1216_v6 = vadd.f32 %v1215_v34, %v1056_v33  ;;  %v1217_v35 = vpop.f32.mrb[41].mxu0 }
 0x346   : > { %v1218_v37 = vadd.f32 %v1217_v35, %v1056_v33  ;;  %v1219_v38 = vpop.f32.mrb[42].mxu0 }
 0x347   : > { %v1220_v40 = vadd.f32 %v1219_v38, %v1061_v36  ;;  %v1221_v42 = vpop.f32.mrb[43].mxu0 }
 0x348   : > { %v1511_v43 = vpack.c.bf16 %v1218_v37, %v1216_v6  ;;  %v1222_v44 = vadd.f32 %v1221_v42, %v1061_v36 }
 0x34a   : > { %1342 = vst [vmem:[%s1942_s26 + $0x60] sm:$0xff] %v1511_v43  ;;  %v1512_v45 = vpack.c.bf16 %v1222_v44, %v1220_v40 }
 0x34c   : > { %1343 = vst [vmem:[%s1942_s26 + $0x68] sm:$0xff] %v1512_v45  ;;  %v1225_v7 = vpop.f32.mrb[44].mxu0 }
 0x34d   : > { %v1226_v47 = vadd.f32 %v1225_v7, %v1066_v46  ;;  %v1227_v48 = vpop.f32.mrb[45].mxu0 }
 0x34e   : > { %v1228_v50 = vadd.f32 %v1227_v48, %v1066_v46  ;;  %v1229_v51 = vpop.f32.mrb[46].mxu0 }
 0x34f   : > { %v1230_v52 = vadd.f32 %v1229_v51, %v1071_v49  ;;  %v1231_v53 = vpop.f32.mrb[47].mxu0 }
 0x350   : > { %v1513_v54 = vpack.c.bf16 %v1228_v50, %v1226_v47  ;;  %v1232_v55 = vadd.f32 %v1231_v53, %v1071_v49 }
 0x352   : > { %1344 = vst [vmem:[%s1942_s26 + $0x70] sm:$0xff] %v1513_v54  ;;  %v1514_v56 = vpack.c.bf16 %v1232_v55, %v1230_v52 }
 0x354   : > { %1345 = vst [vmem:[%s1942_s26 + $0x78] sm:$0xff] %v1514_v56 }
 0x355 PF: > { %s15_s20 = sadd.s32 1, %s1603_s20   ;;  %s1975_s18 = smov %s1599_s19 }
 0x356   : > { %p12_p5 = scmp.ge.s32.totalorder %s15_s20, 4   ;;  %s1976_s19 = smov %s1978_s21 }
 0x358   :  { %14 = sbr.rel (!%p12_p5) target bundleno = 2 (0x2), region = 70 }

</bundles_post_ra>
